<compile_context>
chip_gen: v5e
topology: v5e:2x2
jax: 0.10.0
libtpu: 0.0.40
codegen_flags: <defaults>
</compile_context>

<pallas_src>
import jax
import jax.numpy as jnp
from jax import lax
from jax.experimental import pallas as pl
from jax.experimental.pallas import tpu as pltpu

_HIGHEST = jax.lax.Precision.HIGHEST


def _round_up(n, m):
    return ((n + m - 1) // m) * m


def mynetwork_kernel(x_ref, m1_ref, cb1_ref, m2_ref, cb2_ref,
                     w1_ref, lb1_ref, w2_ref, lb2_ref, o_ref):
    # x_ref : (TB, 576) bf16  one batch tile of the flattened 24x24 image
    # m1_ref: (576, 144) bf16 conv1 (2x2, stride 2) as a matmul; cb1_ref: (1, 144) f32 bias
    # m2_ref: (144, 36)  f32  conv2 (2x2, stride 2) as a matmul; cb2_ref: (1, 36)  f32 bias
    # w1_ref: (36, 12) Linear1^T, lb1_ref: (1, 12); w2_ref: (12, 10) Linear2^T, lb2_ref: (1, 10)
    x = x_ref[...]                                                   # (TB, 576) bf16

    # conv1 + ReLU -> flattened 12x12 map (bf16 operands, f32 accumulation, 1 MXU pass)
    c1 = jnp.dot(x, m1_ref[...],
                 preferred_element_type=jnp.float32) + cb1_ref[...]
    c1 = jnp.maximum(c1, 0.0)                                        # (TB, 144) f32

    # conv2 + ReLU -> flattened 6x6 map == out.view(-1, 36) (DEFAULT precision)
    y2 = jnp.dot(c1, m2_ref[...],
                 preferred_element_type=jnp.float32) + cb2_ref[...]
    y2 = jnp.maximum(y2, 0.0)                                        # (TB, 36) f32

    # Linear(36, 12) + ReLU (tiny: keep HIGHEST for numerics)
    h = jnp.dot(y2, w1_ref[...], precision=_HIGHEST,
                preferred_element_type=jnp.float32) + lb1_ref[...]
    h = jnp.maximum(h, 0.0)                                          # (TB, 12) f32

    # TODO(synk): Dropout(p=0.5) implemented as identity (eval-mode semantics);
    # training mode would need a pltpu.prng_* generated mask.

    # Linear(12, 10)
    o_ref[...] = jnp.dot(h, w2_ref[...], precision=_HIGHEST,
                         preferred_element_type=jnp.float32) + lb2_ref[...]


def _conv_as_matrix(w2x2, in_size, out_size):
    """Matrix M of shape (in_size^2, out_size^2) such that
    (x_flat @ M)[i*out+j] = sum_{dr,dc} w[dr,dc] * x[2i+dr, 2j+dc]  (2x2, stride 2)."""
    rows = jnp.arange(in_size)[:, None]
    outs = jnp.arange(out_size)[None, :]
    sel = [(rows == 2 * outs + d).astype(jnp.float32) for d in range(2)]  # (in, out)
    m = jnp.zeros((in_size * in_size, out_size * out_size), jnp.float32)
    for dr in range(2):
        for dc in range(2):
            m = m + w2x2[dr, dc] * jnp.kron(sel[dr], sel[dc])
    return m


def _choose_tb(B, block_b):
    """Batch-tile height: full-extent block for tiny B (block dim == array dim
    is always legal), otherwise a sublane-aligned tile capped so that the grid
    has at least 2 tiles (keeps v7x's second TensorCore busy)."""
    if B <= 8:
        return B
    return min(block_b, _round_up(pl.cdiv(B, 2), 8))


def mynetwork_forward(x, params, *, block_b=2048):
    """x: (B, 1, 24, 24) float32 (NCHW, C==1). Returns (B, 10) float32."""
    B = x.shape[0]
    assert x.shape[1:] == (1, 24, 24), x.shape

    # Zero-copy flatten (no im2col, no transpose); bf16 stream halves HBM read.
    x_flat = x.reshape(B, 576).astype(jnp.bfloat16)

    tb = _choose_tb(B, block_b)
    grid = (pl.cdiv(B, tb),)           # ragged last block handled by Pallas

    # Weight preprocessing (tiny, one-time, outside the kernel).
    m1 = _conv_as_matrix(params["conv1_w"].reshape(2, 2).astype(jnp.float32),
                         24, 12).astype(jnp.bfloat16)            # (576, 144) bf16
    m2 = _conv_as_matrix(params["conv2_w"].reshape(2, 2).astype(jnp.float32),
                         12, 6)                                  # (144, 36) f32
    cb1 = jnp.full((1, 144), params["conv1_b"].reshape(()), jnp.float32)
    cb2 = jnp.full((1, 36), params["conv2_b"].reshape(()), jnp.float32)
    w1t = params["lin1_w"].T.astype(jnp.float32)                 # (36, 12)
    lb1 = params["lin1_b"].reshape(1, 12).astype(jnp.float32)
    w2t = params["lin2_w"].T.astype(jnp.float32)                 # (12, 10)
    lb2 = params["lin2_b"].reshape(1, 10).astype(jnp.float32)

    def const(shape):  # resident across all batch tiles
        return pl.BlockSpec(shape, lambda i: (0, 0))

    out = pl.pallas_call(
        mynetwork_kernel,
        out_shape=jax.ShapeDtypeStruct((B, 10), jnp.float32),
        grid=grid,
        in_specs=[
            pl.BlockSpec((tb, 576), lambda i: (i, 0)),   # streamed bf16 batch tile
            const((576, 144)), const((1, 144)),          # conv1 as matmul
            const((144, 36)), const((1, 36)),            # conv2 as matmul
            const((36, 12)), const((1, 12)),             # Linear(36, 12)
            const((12, 10)), const((1, 10)),             # Linear(12, 10)
        ],
        out_specs=pl.BlockSpec((tb, 10), lambda i: (i, 0)),
        compiler_params=pltpu.CompilerParams(
            dimension_semantics=("parallel",),
            vmem_limit_bytes=48 * 1024 * 1024),
    )(x_flat, m1, cb1, m2, cb2, w1t, lb1, w2t, lb2)
    return out


def reference_forward(x, params):
    """Pure-JAX f32 reference with identical semantics (real convs, eval-mode dropout)."""
    def conv(y, w, b):
        out = lax.conv_general_dilated(
            y, w, window_strides=(2, 2), padding="VALID",
            dimension_numbers=("NCHW", "OIHW", "NCHW"), precision=_HIGHEST)
        return jax.nn.relu(out + b.reshape(1, -1, 1, 1))

    y = conv(x, params["conv1_w"], params["conv1_b"])
    y = conv(y, params["conv2_w"], params["conv2_b"])
    y = y.reshape(-1, 36)
    h = jax.nn.relu(jnp.dot(y, params["lin1_w"].T, precision=_HIGHEST)
                    + params["lin1_b"])
    return jnp.dot(h, params["lin2_w"].T, precision=_HIGHEST) + params["lin2_b"]


def init_params(key):
    ks = jax.random.split(key, 8)
    return {
        "conv1_w": jax.random.normal(ks[0], (1, 1, 2, 2), jnp.float32) * 0.5,
        "conv1_b": jax.random.normal(ks[1], (1,), jnp.float32) * 0.1,
        "conv2_w": jax.random.normal(ks[2], (1, 1, 2, 2), jnp.float32) * 0.5,
        "conv2_b": jax.random.normal(ks[3], (1,), jnp.float32) * 0.1,
        "lin1_w": jax.random.normal(ks[4], (12, 36), jnp.float32) * (1.0 / 6.0),
        "lin1_b": jax.random.normal(ks[5], (12,), jnp.float32) * 0.1,
        "lin2_w": jax.random.normal(ks[6], (10, 12), jnp.float32) * 0.25,
        "lin2_b": jax.random.normal(ks[7], (10,), jnp.float32) * 0.1,
    }


if __name__ == "__main__":
    key = jax.random.PRNGKey(0)
    k_x, k_p = jax.random.split(key)
    B = 2
    # Input spatial size must be 24x24 so that the flatten produces exactly 36 features.
    x = jax.random.normal(k_x, (B, 1, 24, 24), jnp.float32)
    params = init_params(k_p)

    out = mynetwork_forward(x, params)
    out = jax.block_until_ready(out)

    ref = reference_forward(x, params)
    assert out.shape == (B, 10), out.shape
    # bf16 input stream + single-pass bf16 MXU conv matmuls: ~1e-3 relative error.
    assert jnp.allclose(out, ref, atol=5e-2, rtol=5e-2), (out, ref)

    print("KERNEL_OK")
</pallas_src>

<mosaic_0001>
module attributes {stable_mosaic.version = 11 : i64} {
  func.func @mynetwork_kernel(%arg0: i32, %arg1: memref<2x576xbf16, #tpu.memory_space<vmem>>, %arg2: memref<576x144xbf16, #tpu.memory_space<vmem>>, %arg3: memref<1x144xf32, #tpu.memory_space<vmem>>, %arg4: memref<144x36xf32, #tpu.memory_space<vmem>>, %arg5: memref<1x36xf32, #tpu.memory_space<vmem>>, %arg6: memref<36x12xf32, #tpu.memory_space<vmem>>, %arg7: memref<1x12xf32, #tpu.memory_space<vmem>>, %arg8: memref<12x10xf32, #tpu.memory_space<vmem>>, %arg9: memref<1x10xf32, #tpu.memory_space<vmem>>, %arg10: memref<2x10xf32, #tpu.memory_space<vmem>>) attributes {dimension_semantics = [#tpu.dimension_semantics<parallel>], iteration_bounds = array<i64: 1>, scalar_prefetch = 0 : i64, scratch_operands = 0 : i64, tpu.core_type = #tpu.core_type<tc>, window_params = [{transform_indices = @transform_0, window_bounds = array<i64: 2, 576>}, {pipeline_mode = #tpu.pipeline_mode<synchronous>, transform_indices = @transform_1, window_bounds = array<i64: 576, 144>}, {pipeline_mode = #tpu.pipeline_mode<synchronous>, transform_indices = @transform_2, window_bounds = array<i64: 1, 144>}, {pipeline_mode = #tpu.pipeline_mode<synchronous>, transform_indices = @transform_3, window_bounds = array<i64: 144, 36>}, {pipeline_mode = #tpu.pipeline_mode<synchronous>, transform_indices = @transform_4, window_bounds = array<i64: 1, 36>}, {pipeline_mode = #tpu.pipeline_mode<synchronous>, transform_indices = @transform_5, window_bounds = array<i64: 36, 12>}, {pipeline_mode = #tpu.pipeline_mode<synchronous>, transform_indices = @transform_6, window_bounds = array<i64: 1, 12>}, {pipeline_mode = #tpu.pipeline_mode<synchronous>, transform_indices = @transform_7, window_bounds = array<i64: 12, 10>}, {pipeline_mode = #tpu.pipeline_mode<synchronous>, transform_indices = @transform_8, window_bounds = array<i64: 1, 10>}, {transform_indices = @transform_9, window_bounds = array<i64: 2, 10>}]} {
    %c0 = arith.constant 0 : index
    %c0_0 = arith.constant 0 : index
    %0 = vector.load %arg1[%c0, %c0_0] : memref<2x576xbf16, #tpu.memory_space<vmem>>, vector<2x576xbf16>
    %c0_1 = arith.constant 0 : index
    %c0_2 = arith.constant 0 : index
    %1 = vector.load %arg2[%c0_1, %c0_2] : memref<576x144xbf16, #tpu.memory_space<vmem>>, vector<576x144xbf16>
    %cst = arith.constant dense<0.000000e+00> : vector<2x144xf32>
    %2 = tpu.matmul %0, %1, %cst {dimension_numbers = #tpu.dot_dimension_numbers<[1], [0], [0], [1], [0, 0, 1, 1], [], []>} : vector<2x576xbf16>, vector<576x144xbf16>, vector<2x144xf32> -> vector<2x144xf32>
    %c0_3 = arith.constant 0 : index
    %c0_4 = arith.constant 0 : index
    %3 = vector.load %arg3[%c0_3, %c0_4] : memref<1x144xf32, #tpu.memory_space<vmem>>, vector<1x144xf32>
    %4 = vector.broadcast %3 : vector<1x144xf32> to vector<2x144xf32>
    %5 = arith.addf %2, %4 : vector<2x144xf32>
    %cst_5 = arith.constant 0.000000e+00 : f32
    %6 = vector.broadcast %cst_5 : f32 to vector<2x144xf32>
    %7 = arith.maximumf %5, %6 : vector<2x144xf32>
    %c0_6 = arith.constant 0 : index
    %c0_7 = arith.constant 0 : index
    %8 = vector.load %arg4[%c0_6, %c0_7] : memref<144x36xf32, #tpu.memory_space<vmem>>, vector<144x36xf32>
    %cst_8 = arith.constant dense<0.000000e+00> : vector<2x36xf32>
    %9 = tpu.matmul %7, %8, %cst_8 {dimension_numbers = #tpu.dot_dimension_numbers<[1], [0], [0], [1], [0, 0, 1, 1], [], []>} : vector<2x144xf32>, vector<144x36xf32>, vector<2x36xf32> -> vector<2x36xf32>
    %c0_9 = arith.constant 0 : index
    %c0_10 = arith.constant 0 : index
    %10 = vector.load %arg5[%c0_9, %c0_10] : memref<1x36xf32, #tpu.memory_space<vmem>>, vector<1x36xf32>
    %11 = vector.broadcast %10 : vector<1x36xf32> to vector<2x36xf32>
    %12 = arith.addf %9, %11 : vector<2x36xf32>
    %cst_11 = arith.constant 0.000000e+00 : f32
    %13 = vector.broadcast %cst_11 : f32 to vector<2x36xf32>
    %14 = arith.maximumf %12, %13 : vector<2x36xf32>
    %c0_12 = arith.constant 0 : index
    %c0_13 = arith.constant 0 : index
    %15 = vector.load %arg6[%c0_12, %c0_13] : memref<36x12xf32, #tpu.memory_space<vmem>>, vector<36x12xf32>
    %cst_14 = arith.constant dense<0.000000e+00> : vector<2x12xf32>
    %16 = tpu.matmul %14, %15, %cst_14 {dimension_numbers = #tpu.dot_dimension_numbers<[1], [0], [0], [1], [0, 0, 1, 1], [], []>, precision = #tpu.contract_precision<fp32>} : vector<2x36xf32>, vector<36x12xf32>, vector<2x12xf32> -> vector<2x12xf32>
    %c0_15 = arith.constant 0 : index
    %c0_16 = arith.constant 0 : index
    %17 = vector.load %arg7[%c0_15, %c0_16] : memref<1x12xf32, #tpu.memory_space<vmem>>, vector<1x12xf32>
    %18 = vector.broadcast %17 : vector<1x12xf32> to vector<2x12xf32>
    %19 = arith.addf %16, %18 : vector<2x12xf32>
    %cst_17 = arith.constant 0.000000e+00 : f32
    %20 = vector.broadcast %cst_17 : f32 to vector<2x12xf32>
    %21 = arith.maximumf %19, %20 : vector<2x12xf32>
    %c0_18 = arith.constant 0 : index
    %c0_19 = arith.constant 0 : index
    %22 = vector.load %arg8[%c0_18, %c0_19] : memref<12x10xf32, #tpu.memory_space<vmem>>, vector<12x10xf32>
    %cst_20 = arith.constant dense<0.000000e+00> : vector<2x10xf32>
    %23 = tpu.matmul %21, %22, %cst_20 {dimension_numbers = #tpu.dot_dimension_numbers<[1], [0], [0], [1], [0, 0, 1, 1], [], []>, precision = #tpu.contract_precision<fp32>} : vector<2x12xf32>, vector<12x10xf32>, vector<2x10xf32> -> vector<2x10xf32>
    %c0_21 = arith.constant 0 : index
    %c0_22 = arith.constant 0 : index
    %24 = vector.load %arg9[%c0_21, %c0_22] : memref<1x10xf32, #tpu.memory_space<vmem>>, vector<1x10xf32>
    %25 = vector.broadcast %24 : vector<1x10xf32> to vector<2x10xf32>
    %26 = arith.addf %23, %25 : vector<2x10xf32>
    %c0_23 = arith.constant 0 : index
    %c0_24 = arith.constant 0 : index
    %27 = vector.load %arg10[%c0_23, %c0_24] : memref<2x10xf32, #tpu.memory_space<vmem>>, vector<2x10xf32>
    tpu.vector_store %arg10[%c0_23, %c0_24], %26 {strides = array<i32>} : memref<2x10xf32, #tpu.memory_space<vmem>>, vector<2x10xf32>,
    return
  }
  func.func @transform_0(%arg0: i32) -> (i32, i32) {
    %c0_i32 = arith.constant 0 : i32
    %c0_i32_0 = arith.constant 0 : i32
    return %arg0, %c0_i32 : i32, i32
  }
  func.func @transform_1(%arg0: i32) -> (i32, i32) {
    %c0_i32 = arith.constant 0 : i32
    %c0_i32_0 = arith.constant 0 : i32
    %c0_i32_1 = arith.constant 0 : i32
    return %c0_i32, %c0_i32_0 : i32, i32
  }
  func.func @transform_2(%arg0: i32) -> (i32, i32) {
    %c0_i32 = arith.constant 0 : i32
    %c0_i32_0 = arith.constant 0 : i32
    %c0_i32_1 = arith.constant 0 : i32
    return %c0_i32, %c0_i32_0 : i32, i32
  }
  func.func @transform_3(%arg0: i32) -> (i32, i32) {
    %c0_i32 = arith.constant 0 : i32
    %c0_i32_0 = arith.constant 0 : i32
    %c0_i32_1 = arith.constant 0 : i32
    return %c0_i32, %c0_i32_0 : i32, i32
  }
  func.func @transform_4(%arg0: i32) -> (i32, i32) {
    %c0_i32 = arith.constant 0 : i32
    %c0_i32_0 = arith.constant 0 : i32
    %c0_i32_1 = arith.constant 0 : i32
    return %c0_i32, %c0_i32_0 : i32, i32
  }
  func.func @transform_5(%arg0: i32) -> (i32, i32) {
    %c0_i32 = arith.constant 0 : i32
    %c0_i32_0 = arith.constant 0 : i32
    %c0_i32_1 = arith.constant 0 : i32
    return %c0_i32, %c0_i32_0 : i32, i32
  }
  func.func @transform_6(%arg0: i32) -> (i32, i32) {
    %c0_i32 = arith.constant 0 : i32
    %c0_i32_0 = arith.constant 0 : i32
    %c0_i32_1 = arith.constant 0 : i32
    return %c0_i32, %c0_i32_0 : i32, i32
  }
  func.func @transform_7(%arg0: i32) -> (i32, i32) {
    %c0_i32 = arith.constant 0 : i32
    %c0_i32_0 = arith.constant 0 : i32
    %c0_i32_1 = arith.constant 0 : i32
    return %c0_i32, %c0_i32_0 : i32, i32
  }
  func.func @transform_8(%arg0: i32) -> (i32, i32) {
    %c0_i32 = arith.constant 0 : i32
    %c0_i32_0 = arith.constant 0 : i32
    %c0_i32_1 = arith.constant 0 : i32
    return %c0_i32, %c0_i32_0 : i32, i32
  }
  func.func @transform_9(%arg0: i32) -> (i32, i32) {
    %c0_i32 = arith.constant 0 : i32
    %c0_i32_0 = arith.constant 0 : i32
    return %arg0, %c0_i32 : i32, i32
  }
}

</mosaic_0001>

<bundles_post_ra>
// kernel: tpu_custom_call.1
= control target key start
LH: loop header
LB: loop body
LE: loop exit
PB: predicated region body
PF: predicated region fallthrough
CT: control target
= control target key end

     0   :  { %vm484_vm0 = vcmask 523264   ;;  %s2085_s0 = inlined_call_operand.vmem [shape: bf16[2,576], index: 0, kind: input, shape index: {}]   ;;  %s2086_s1 = inlined_call_operand.vmem [shape: bf16[576,144], index: 1, kind: input, shape index: {}]   ;;  %s2087_s2 = inlined_call_operand.vmem [shape: f32[1,144], index: 2, kind: input, shape index: {}]   ;;  %s2088_s3 = inlined_call_operand.vmem [shape: f32[144,36], index: 3, kind: input, shape index: {}]   ;;  %s2089_s4 = inlined_call_operand.vmem [shape: f32[1,36], index: 4, kind: input, shape index: {}]   ;;  %s2090_s5 = inlined_call_operand.vmem [shape: f32[36,12], index: 5, kind: input, shape index: {}]   ;;  %s2091_s6 = inlined_call_operand.vmem [shape: f32[1,12], index: 6, kind: input, shape index: {}]   ;;  %s2092_s7 = inlined_call_operand.vmem [shape: f32[12,10], index: 7, kind: input, shape index: {}]   ;;  %s2093_s8 = inlined_call_operand.vmem [shape: f32[1,10], index: 8, kind: input, shape index: {}]   ;;  %s2094_s9 = inlined_call_operand.hbm [shape: f32[2,10], index: 9, kind: output, shape index: {}]  }
   0x1   :  { %v1150_v0 = vld [vmem:[%s2086_s1 + $0x70] sm:$0xf]  ;;  %v1398_v1 = vld [vmem:[%s2086_s1 + $0x74] sm:$0xf0]  ;;  %v1142_v11 = vld [vmem:[%s2086_s1 + $0x60] sm:$0xf] }
   0x2   :  { %v1214_v2 = vld [vmem:[%s2086_s1 + $0xf0] sm:$0xf]  ;;  %v1151_v3 = vor.u32 %v1398_v1, %v1150_v0  ;;  %v1414_v4 = vld [vmem:[%s2086_s1 + $0xf4] sm:$0xf0]  ;;  %v1396_v13 = vld [vmem:[%s2086_s1 + $0x64] sm:$0xf0] }
   0x3   :  { %v1278_v5 = vld [vmem:[%s2086_s1 + $0x170] sm:$0xf]  ;;  %v1430_v6 = vld [vmem:[%s2086_s1 + $0x174] sm:$0xf0]  ;;  %v1215_v7 = vor.u32 %v1414_v4, %v1214_v2  ;;  %v1206_v14 = vld [vmem:[%s2086_s1 + $0xe0] sm:$0xf]  ;;  %v1143_v16 = vor.u32 %v1396_v13, %v1142_v11 }
   0x4   :  { %v1279_v8 = vor.u32 %v1430_v6, %v1278_v5  ;;  %v1342_v9 = vld [vmem:[%s2086_s1 + $0x1f0] sm:$0xf]  ;;  %v1446_v10 = vld [vmem:[%s2086_s1 + $0x1f4] sm:$0xf0]  ;;  %487 = vmatpush.bf16.msra.mxu0 %v1151_v3  ;;  %v1412_v15 = vld [vmem:[%s2086_s1 + $0xe4] sm:$0xf0] }
   0x5   :  { %v1343_v12 = vor.u32 %v1446_v10, %v1342_v9  ;;  %500 = vmatpush.bf16.msra.mxu1 %v1215_v7  ;;  %v1207_v17 = vor.u32 %v1412_v15, %v1206_v14  ;;  %v1270_v18 = vld [vmem:[%s2086_s1 + $0x160] sm:$0xf]  ;;  %v1428_v19 = vld [vmem:[%s2086_s1 + $0x164] sm:$0xf0]  ;;  %v1134_v23 = vld [vmem:[%s2086_s1 + $0x50] sm:$0xf] }
   0x6   :  { %513 = vmatpush.bf16.msra.mxu2 %v1279_v8  ;;  %v1334_v20 = vld [vmem:[%s2086_s1 + $0x1e0] sm:$0xf]  ;;  %v1271_v21 = vor.u32 %v1428_v19, %v1270_v18  ;;  %v1444_v22 = vld [vmem:[%s2086_s1 + $0x1e4] sm:$0xf0]  ;;  %v1394_v24 = vld [vmem:[%s2086_s1 + $0x54] sm:$0xf0] }
   0x7   :  { %526 = vmatpush.bf16.msra.mxu3 %v1343_v12  ;;  %v1335_v25 = vor.u32 %v1444_v22, %v1334_v20  ;;  %v1198_v26 = vld [vmem:[%s2086_s1 + $0xd0] sm:$0xf]  ;;  %v1410_v27 = vld [vmem:[%s2086_s1 + $0xd4] sm:$0xf0]  ;;  %v1135_v29 = vor.u32 %v1394_v24, %v1134_v23  ;;  %v1126_v35 = vld [vmem:[%s2086_s1 + $0x40] sm:$0xf] }
   0x8   :  { %v1262_v28 = vld [vmem:[%s2086_s1 + $0x150] sm:$0xf]  ;;  %488 = vmatpush.bf16.msra.mxu0 %v1143_v16  ;;  %v1426_v30 = vld [vmem:[%s2086_s1 + $0x154] sm:$0xf0]  ;;  %v1199_v33 = vor.u32 %v1410_v27, %v1198_v26  ;;  %v1392_v36 = vld [vmem:[%s2086_s1 + $0x44] sm:$0xf0] }
   0x9   :  { %v1326_v31 = vld [vmem:[%s2086_s1 + $0x1d0] sm:$0xf]  ;;  %v1442_v32 = vld [vmem:[%s2086_s1 + $0x1d4] sm:$0xf0]  ;;  %501 = vmatpush.bf16.msra.mxu1 %v1207_v17  ;;  %v1263_v34 = vor.u32 %v1426_v30, %v1262_v28  ;;  %v1190_v37 = vld [vmem:[%s2086_s1 + $0xc0] sm:$0xf]  ;;  %v1127_v44 = vor.u32 %v1392_v36, %v1126_v35 }
   0xa   :  { %514 = vmatpush.bf16.msra.mxu2 %v1271_v21  ;;  %v1327_v38 = vor.u32 %v1442_v32, %v1326_v31  ;;  %v1408_v39 = vld [vmem:[%s2086_s1 + $0xc4] sm:$0xf0]  ;;  %v1254_v40 = vld [vmem:[%s2086_s1 + $0x140] sm:$0xf]  ;;  %v1118_v47 = vld [vmem:[%s2086_s1 + $0x30] sm:$0xf] }
   0xb   :  { %527 = vmatpush.bf16.msra.mxu3 %v1335_v25  ;;  %v1424_v41 = vld [vmem:[%s2086_s1 + $0x144] sm:$0xf0]  ;;  %v1318_v42 = vld [vmem:[%s2086_s1 + $0x1c0] sm:$0xf]  ;;  %v1191_v45 = vor.u32 %v1408_v39, %v1190_v37  ;;  %v1390_v48 = vld [vmem:[%s2086_s1 + $0x34] sm:$0xf0] }
   0xc   :  { %v1440_v43 = vld [vmem:[%s2086_s1 + $0x1c4] sm:$0xf0]  ;;  %489 = vmatpush.bf16.msra.mxu0 %v1135_v29  ;;  %v1255_v46 = vor.u32 %v1424_v41, %v1254_v40  ;;  %v1182_v49 = vld [vmem:[%s2086_s1 + $0xb0] sm:$0xf]  ;;  %v1406_v51 = vld [vmem:[%s2086_s1 + $0xb4] sm:$0xf0]  ;;  %v1119_v56 = vor.u32 %v1390_v48, %v1118_v47 }
   0xd   :  { %502 = vmatpush.bf16.msra.mxu1 %v1199_v33  ;;  %v1319_v50 = vor.u32 %v1440_v43, %v1318_v42  ;;  %v1246_v52 = vld [vmem:[%s2086_s1 + $0x130] sm:$0xf]  ;;  %v1422_v53 = vld [vmem:[%s2086_s1 + $0x134] sm:$0xf0]  ;;  %v1183_v57 = vor.u32 %v1406_v51, %v1182_v49  ;;  %v1110_v59 = vld [vmem:[%s2086_s1 + $0x20] sm:$0xf] }
   0xe   :  { %515 = vmatpush.bf16.msra.mxu2 %v1263_v34  ;;  %v1310_v54 = vld [vmem:[%s2086_s1 + $0x1b0] sm:$0xf]  ;;  %v1438_v55 = vld [vmem:[%s2086_s1 + $0x1b4] sm:$0xf0]  ;;  %v1247_v58 = vor.u32 %v1422_v53, %v1246_v52  ;;  %v1388_v60 = vld [vmem:[%s2086_s1 + $0x24] sm:$0xf0] }
   0xf   :  { %528 = vmatpush.bf16.msra.mxu3 %v1327_v38  ;;  %v1174_v61 = vld [vmem:[%s2086_s1 + $0xa0] sm:$0xf]  ;;  %v1311_v62 = vor.u32 %v1438_v55, %v1310_v54  ;;  %v1404_v63 = vld [vmem:[%s2086_s1 + $0xa4] sm:$0xf0]  ;;  %v1111_v4 = vor.u32 %v1388_v60, %v1110_v59  ;;  %v1102_v7 = vld [vmem:[%s2086_s1 + $0x10] sm:$0xf] }
  0x10   :  { %490 = vmatpush.bf16.msra.mxu0 %v1127_v44  ;;  %v1238_v0 = vld [vmem:[%s2086_s1 + $0x120] sm:$0xf]  ;;  %v1420_v1 = vld [vmem:[%s2086_s1 + $0x124] sm:$0xf0]  ;;  %v1175_v5 = vor.u32 %v1404_v63, %v1174_v61  ;;  %v1386_v8 = vld [vmem:[%s2086_s1 + $0x14] sm:$0xf0] }
  0x11   :  { %503 = vmatpush.bf16.msra.mxu1 %v1191_v45  ;;  %v1302_v2 = vld [vmem:[%s2086_s1 + $0x1a0] sm:$0xf]  ;;  %v1436_v3 = vld [vmem:[%s2086_s1 + $0x1a4] sm:$0xf0]  ;;  %v1239_v6 = vor.u32 %v1420_v1, %v1238_v0  ;;  %v1166_v9 = vld [vmem:[%s2086_s1 + $0x90] sm:$0xf]  ;;  %v1103_v17 = vor.u32 %v1386_v8, %v1102_v7 }
  0x12   :  { %516 = vmatpush.bf16.msra.mxu2 %v1255_v46  ;;  %v1303_v10 = vor.u32 %v1436_v3, %v1302_v2  ;;  %v1402_v11 = vld [vmem:[%s2086_s1 + $0x94] sm:$0xf0]  ;;  %v1230_v12 = vld [vmem:[%s2086_s1 + $0x110] sm:$0xf]  ;;  %v1094_v16 = vld [vmem:[%s2086_s1] sm:$0xf] }
  0x13   :  { %529 = vmatpush.bf16.msra.mxu3 %v1319_v50  ;;  %v1418_v13 = vld [vmem:[%s2086_s1 + $0x114] sm:$0xf0]  ;;  %v1294_v14 = vld [vmem:[%s2086_s1 + $0x190] sm:$0xf]  ;;  %v1384_v18 = vld [vmem:[%s2086_s1 + $0x4] sm:$0xf0]  ;;  %v1167_v21 = vor.u32 %v1402_v11, %v1166_v9 }
  0x14   :  { %491 = vmatpush.bf16.msra.mxu0 %v1119_v56  ;;  %v1434_v15 = vld [vmem:[%s2086_s1 + $0x194] sm:$0xf0]  ;;  %v1158_v19 = vld [vmem:[%s2086_s1 + $0x80] sm:$0xf]  ;;  %v1400_v20 = vld [vmem:[%s2086_s1 + $0x84] sm:$0xf0]  ;;  %v1231_v22 = vor.u32 %v1418_v13, %v1230_v12  ;;  %v1095_v33 = vor.u32 %v1384_v18, %v1094_v16 }
  0x15   :  { %504 = vmatpush.bf16.msra.mxu1 %v1183_v57  ;;  %v1222_v23 = vld [vmem:[%s2086_s1 + $0x100] sm:$0xf]  ;;  %v1416_v24 = vld [vmem:[%s2086_s1 + $0x104] sm:$0xf0]  ;;  %v1295_v26 = vor.u32 %v1434_v15, %v1294_v14  ;;  %v1374_v28 = vld [vmem:[%s2086_s1 + $0x230] sm:$0xf]  ;;  %v1159_v36 = vor.u32 %v1400_v20, %v1158_v19 }
  0x16   :  { %517 = vmatpush.bf16.msra.mxu2 %v1247_v58  ;;  %v1286_v25 = vld [vmem:[%s2086_s1 + $0x180] sm:$0xf]  ;;  %v1432_v27 = vld [vmem:[%s2086_s1 + $0x184] sm:$0xf0]  ;;  %v1454_v29 = vld [vmem:[%s2086_s1 + $0x234] sm:$0xf0]  ;;  %v1223_v37 = vor.u32 %v1416_v24, %v1222_v23 }
  0x17   :  { %530 = vmatpush.bf16.msra.mxu3 %v1311_v62  ;;  %v1397_v30 = vld [vmem:[%s2086_s1 + $0x74] sm:$0xf]  ;;  %v1152_v31 = vld [vmem:[%s2086_s1 + $0x78] sm:$0xf0]  ;;  %v34_v32 = vld [vmem:[%s2085_s0] sm:$0x1f]  ;;  %v1287_v40 = vor.u32 %v1432_v27, %v1286_v25  ;;  %v1375_v41 = vor.u32 %v1454_v29, %v1374_v28 }
  0x18   :  { %492 = vmatpush.bf16.msra.mxu0 %v1111_v4  ;;  %v1413_v34 = vld [vmem:[%s2086_s1 + $0xf4] sm:$0xf]  ;;  %v1216_v35 = vld [vmem:[%s2086_s1 + $0xf8] sm:$0xf0]  ;;  %114 = vst [vmem:[#allocation1] ss:$9 sm:$0xff] %v34_v32  ;;  %v1155_v42 = vor.u32 %v1397_v30, %v1152_v31 }
  0x19   :  { %505 = vmatpush.bf16.msra.mxu1 %v1175_v5  ;;  %v1429_v38 = vld [vmem:[%s2086_s1 + $0x174] sm:$0xf]  ;;  %v1280_v39 = vld [vmem:[%s2086_s1 + $0x178] sm:$0xf0]  ;;  %v1219_v43 = vor.u32 %v1413_v34, %v1216_v35  ;;  %v1366_v44 = vld [vmem:[%s2086_s1 + $0x220] sm:$0xf] }
  0x1a   :  { %518 = vmatpush.bf16.msra.mxu2 %v1239_v6  ;;  %v1452_v45 = vld [vmem:[%s2086_s1 + $0x224] sm:$0xf0]  ;;  %v1395_v46 = vld [vmem:[%s2086_s1 + $0x64] sm:$0xf]  ;;  %v1283_v47 = vor.u32 %v1429_v38, %v1280_v39  ;;  %v1144_v48 = vld [vmem:[%s2086_s1 + $0x68] sm:$0xf0] }
  0x1b   :  { %531 = vmatpush.bf16.msra.mxu3 %v1303_v10  ;;  %v1411_v49 = vld [vmem:[%s2086_s1 + $0xe4] sm:$0xf]  ;;  %v1208_v50 = vld [vmem:[%s2086_s1 + $0xe8] sm:$0xf0]  ;;  %v1358_v53 = vld [vmem:[%s2086_s1 + $0x210] sm:$0xf]  ;;  %v1367_v54 = vor.u32 %v1452_v45, %v1366_v44  ;;  %v1147_v58 = vor.u32 %v1395_v46, %v1144_v48 }
  0x1c   :  { %493 = vmatpush.bf16.msra.mxu0 %v1103_v17  ;;  %v1427_v51 = vld [vmem:[%s2086_s1 + $0x164] sm:$0xf]  ;;  %v1272_v52 = vld [vmem:[%s2086_s1 + $0x168] sm:$0xf0]  ;;  %v1450_v55 = vld [vmem:[%s2086_s1 + $0x214] sm:$0xf0]  ;;  %v1211_v59 = vor.u32 %v1411_v49, %v1208_v50 }
  0x1d   :  { %506 = vmatpush.bf16.msra.mxu1 %v1167_v21  ;;  %v1393_v56 = vld [vmem:[%s2086_s1 + $0x54] sm:$0xf]  ;;  %v1136_v57 = vld [vmem:[%s2086_s1 + $0x58] sm:$0xf0]  ;;  %v1275_v63 = vor.u32 %v1427_v51, %v1272_v52  ;;  %v1359_v5 = vor.u32 %v1450_v55, %v1358_v53  ;;  %v1350_v6 = vld [vmem:[%s2086_s1 + $0x200] sm:$0xf] }
  0x1e   :  { %519 = vmatpush.bf16.msra.mxu2 %v1231_v22  ;;  %v1409_v0 = vld [vmem:[%s2086_s1 + $0xd4] sm:$0xf]  ;;  %v1200_v1 = vld [vmem:[%s2086_s1 + $0xd8] sm:$0xf0]  ;;  %v1139_v7 = vor.u32 %v1393_v56, %v1136_v57  ;;  %v1448_v9 = vld [vmem:[%s2086_s1 + $0x204] sm:$0xf0] }
  0x1f   :  { %532 = vmatpush.bf16.msra.mxu3 %v1295_v26  ;;  %v1791_v60 = vld [vmem:[#allocation1] sm:$0xff]  ;;  %v1793_v61 = vld [vmem:[#allocation1 + $0x9] sm:$0xff]  ;;  %v1795_v62 = vld [vmem:[#allocation1 + $0x12] sm:$0xff]  ;;  %v1203_v8 = vor.u32 %v1409_v0, %v1200_v1  ;;  %v1351_v19 = vor.u32 %v1448_v9, %v1350_v6 }
  0x20   :  { %494 = vmatpush.bf16.msra.mxu0 %v1095_v33  ;;  %v1804_v2 = vld [vmem:[#allocation1 + $0x1b] sm:$0xff]  ;;  %v1425_v3 = vld [vmem:[%s2086_s1 + $0x154] sm:$0xf]  ;;  %v1391_v10 = vld [vmem:[%s2086_s1 + $0x44] sm:$0xf] }
  0x21   :  { %507 = vmatpush.bf16.msra.mxu1 %v1159_v36  ;;  %v1264_v4 = vld [vmem:[%s2086_s1 + $0x158] sm:$0xf0]  ;;  %v1128_v11 = vld [vmem:[%s2086_s1 + $0x48] sm:$0xf0]  ;;  %v1407_v13 = vld [vmem:[%s2086_s1 + $0xc4] sm:$0xf] }
  0x22   :  { %520 = vmatpush.bf16.msra.mxu2 %v1223_v37  ;;  %v1267_v12 = vor.u32 %v1425_v3, %v1264_v4  ;;  %v1192_v14 = vld [vmem:[%s2086_s1 + $0xc8] sm:$0xf0]  ;;  %v1423_v15 = vld [vmem:[%s2086_s1 + $0x144] sm:$0xf]  ;;  %v1445_v17 = vld [vmem:[%s2086_s1 + $0x1f4] sm:$0xf]  ;;  %v1131_v20 = vor.u32 %v1391_v10, %v1128_v11 }
  0x23   :  { %533 = vmatpush.bf16.msra.mxu3 %v1287_v40  ;;  %495 = vmatmul.bf16.vlgmr.msra.gmra.mxu0 %v1791_v60  ;;  %v1256_v16 = vld [vmem:[%s2086_s1 + $0x148] sm:$0xf0]  ;;  %v1344_v18 = vld [vmem:[%s2086_s1 + $0x1f8] sm:$0xf0]  ;;  %v1195_v21 = vor.u32 %v1407_v13, %v1192_v14  ;;  %v1389_v22 = vld [vmem:[%s2086_s1 + $0x34] sm:$0xf] }
  0x24   :  { %543 = vmatpush.bf16.msrb.mxu0 %v1375_v41  ;;  %508 = vmatmul.bf16.vlgmr.msra.gmra.mxu1 %v1793_v61  ;;  %v1120_v23 = vld [vmem:[%s2086_s1 + $0x38] sm:$0xf0]  ;;  %v1259_v24 = vor.u32 %v1423_v15, %v1256_v16  ;;  %v1347_v25 = vor.u32 %v1445_v17, %v1344_v18  ;;  %v1405_v26 = vld [vmem:[%s2086_s1 + $0xb4] sm:$0xf]  ;;  %v1443_v30 = vld [vmem:[%s2086_s1 + $0x1e4] sm:$0xf] }
  0x25   :  { %552 = vmatpush.bf16.msrb.mxu1 %v1155_v42  ;;  %521 = vmatmul.bf16.vlgmr.msra.gmra.mxu2 %v1795_v62  ;;  %v1184_v27 = vld [vmem:[%s2086_s1 + $0xb8] sm:$0xf0]  ;;  %v1421_v28 = vld [vmem:[%s2086_s1 + $0x134] sm:$0xf]  ;;  %v1336_v31 = vld [vmem:[%s2086_s1 + $0x1e8] sm:$0xf0]  ;;  %v1123_v32 = vor.u32 %v1389_v22, %v1120_v23 }
  0x26   :  { %565 = vmatpush.bf16.msrb.mxu2 %v1219_v43  ;;  %534 = vmatmul.bf16.vlgmr.msra.gmra.mxu3 %v1804_v2  ;;  %v1248_v29 = vld [vmem:[%s2086_s1 + $0x138] sm:$0xf0]  ;;  %v1187_v33 = vor.u32 %v1405_v26, %v1184_v27  ;;  %v1387_v34 = vld [vmem:[%s2086_s1 + $0x24] sm:$0xf]  ;;  %v1112_v35 = vld [vmem:[%s2086_s1 + $0x28] sm:$0xf0]  ;;  %v1339_v37 = vor.u32 %v1443_v30, %v1336_v31 }
  0x27   :  { %578 = vmatpush.bf16.msrb.mxu3 %v1283_v47  ;;  %v1251_v36 = vor.u32 %v1421_v28, %v1248_v29  ;;  %v1403_v38 = vld [vmem:[%s2086_s1 + $0xa4] sm:$0xf]  ;;  %v1176_v39 = vld [vmem:[%s2086_s1 + $0xa8] sm:$0xf0]  ;;  %v1441_v42 = vld [vmem:[%s2086_s1 + $0x1d4] sm:$0xf]  ;;  %v1115_v46 = vor.u32 %v1387_v34, %v1112_v35 }
  0x28   :  { %544 = vmatpush.bf16.msrb.mxu0 %v1367_v54  ;;  %v1419_v40 = vld [vmem:[%s2086_s1 + $0x124] sm:$0xf]  ;;  %v1240_v41 = vld [vmem:[%s2086_s1 + $0x128] sm:$0xf0]  ;;  %v1328_v43 = vld [vmem:[%s2086_s1 + $0x1d8] sm:$0xf0]  ;;  %v1179_v47 = vor.u32 %v1403_v38, %v1176_v39 }
  0x29   :  { %553 = vmatpush.bf16.msrb.mxu1 %v1147_v58  ;;  %v1893_v44 = vld [vmem:[#allocation1 + $0x24] sm:$0xff]  ;;  %v1385_v45 = vld [vmem:[%s2086_s1 + $0x14] sm:$0xf]  ;;  %v1104_v48 = vld [vmem:[%s2086_s1 + $0x18] sm:$0xf0]  ;;  %v1243_v51 = vor.u32 %v1419_v40, %v1240_v41  ;;  %v1331_v52 = vor.u32 %v1441_v42, %v1328_v43 }
  0x2a   :  { %566 = vmatpush.bf16.msrb.mxu2 %v1211_v59  ;;  %v1401_v49 = vld [vmem:[%s2086_s1 + $0x94] sm:$0xf]  ;;  %v1168_v50 = vld [vmem:[%s2086_s1 + $0x98] sm:$0xf0]  ;;  %v1439_v55 = vld [vmem:[%s2086_s1 + $0x1c4] sm:$0xf] }
  0x2b   :  { %579 = vmatpush.bf16.msrb.mxu3 %v1275_v63  ;;  %v1417_v53 = vld [vmem:[%s2086_s1 + $0x114] sm:$0xf]  ;;  %v1232_v54 = vld [vmem:[%s2086_s1 + $0x118] sm:$0xf0]  ;;  %v1320_v56 = vld [vmem:[%s2086_s1 + $0x1c8] sm:$0xf0] }
  0x2c   :  { %545 = vmatpush.bf16.msrb.mxu0 %v1359_v5 }
  0x2d   :  { %554 = vmatpush.bf16.msrb.mxu1 %v1139_v7 }
  0x2e   :  { %567 = vmatpush.bf16.msrb.mxu2 %v1203_v8 }
  0x2f   :  { %580 = vmatpush.bf16.msrb.mxu3 %v1267_v12 }
  0x30   :  { %546 = vmatpush.bf16.msrb.mxu0 %v1351_v19 }
  0x31   :  { %555 = vmatpush.bf16.msrb.mxu1 %v1131_v20 }
  0x32   :  { %568 = vmatpush.bf16.msrb.mxu2 %v1195_v21 }
  0x33   :  { %581 = vmatpush.bf16.msrb.mxu3 %v1259_v24  ;;  %1380 = vmatmul.msk.bf16.vlgmr.msrb.gmra.mxu0 %vm484_vm0, %v1893_v44 }
  0x34   :  { %591 = vmatpush.bf16.msra.mxu0 %v1347_v25 }
  0x35   :  { %556 = vmatpush.bf16.msrb.mxu1 %v1123_v32 }
  0x36   :  { %569 = vmatpush.bf16.msrb.mxu2 %v1187_v33 }
  0x37   :  { %582 = vmatpush.bf16.msrb.mxu3 %v1251_v36 }
  0x38   :  { %592 = vmatpush.bf16.msra.mxu0 %v1339_v37 }
  0x39   :  { %14 = vsyncpa [#allocation3], 0  ;;  %557 = vmatpush.bf16.msrb.mxu1 %v1115_v46  ;;  %v1107_v57 = vor.u32 %v1385_v45, %v1104_v48  ;;  %v1171_v58 = vor.u32 %v1401_v49, %v1168_v50  ;;  %v1383_v59 = vld [vmem:[%s2086_s1 + $0x4] sm:$0xf]  ;;  %v1096_v63 = vld [vmem:[%s2086_s1 + $0x8] sm:$0xf0]  ;;  %v1235_v0 = vor.u32 %v1417_v53, %v1232_v54  ;;  %v1323_v1 = vor.u32 %v1439_v55, %v1320_v56 }
  0x3a   :  { %570 = vmatpush.bf16.msrb.mxu2 %v1179_v47  ;;  %v1399_v3 = vld [vmem:[%s2086_s1 + $0x84] sm:$0xf]  ;;  %v1160_v4 = vld [vmem:[%s2086_s1 + $0x88] sm:$0xf0]  ;;  %v1437_v7 = vld [vmem:[%s2086_s1 + $0x1b4] sm:$0xf]  ;;  %v1099_v11 = vor.u32 %v1383_v59, %v1096_v63 }
  0x3b   :  { %583 = vmatpush.bf16.msrb.mxu3 %v1243_v51  ;;  %v1415_v5 = vld [vmem:[%s2086_s1 + $0x104] sm:$0xf]  ;;  %v1224_v6 = vld [vmem:[%s2086_s1 + $0x108] sm:$0xf0]  ;;  %v1312_v8 = vld [vmem:[%s2086_s1 + $0x1b8] sm:$0xf0]  ;;  %v1163_v12 = vor.u32 %v1399_v3, %v1160_v4 }
  0x3c   :  { %593 = vmatpush.bf16.msra.mxu0 %v1331_v52  ;;  %v1453_v9 = vld [vmem:[%s2086_s1 + $0x234] sm:$0xf]  ;;  %v1376_v10 = vld [vmem:[%s2086_s1 + $0x238] sm:$0xf0]  ;;  %v1227_v13 = vor.u32 %v1415_v5, %v1224_v6  ;;  %v1315_v14 = vor.u32 %v1437_v7, %v1312_v8  ;;  %v1435_v16 = vld [vmem:[%s2086_s1 + $0x1a4] sm:$0xf] }
  0x3d   :  { %558 = vmatpush.bf16.msrb.mxu1 %v1107_v57  ;;  %v1379_v15 = vor.u32 %v1453_v9, %v1376_v10  ;;  %v1304_v17 = vld [vmem:[%s2086_s1 + $0x1a8] sm:$0xf0]  ;;  %v1451_v18 = vld [vmem:[%s2086_s1 + $0x224] sm:$0xf]  ;;  %v634_v20 = vld [vmem:[%s2088_s3 + $0x78] sm:$0xff]  ;;  %vm641_vm1 = vcmask 130048  }
  0x3e   :  { %571 = vmatpush.bf16.msrb.mxu2 %v1171_v58  ;;  %v1368_v19 = vld [vmem:[%s2086_s1 + $0x228] sm:$0xf0]  ;;  %v1307_v21 = vor.u32 %v1435_v16, %v1304_v17  ;;  %v633_v22 = vld [vmem:[%s2088_s3 + $0x70] sm:$0xff]  ;;  %v1296_v25 = vld [vmem:[%s2086_s1 + $0x198] sm:$0xf0]  ;;  %vm699_vm2 = vcmask 1043456  }
  0x3f   :  { %584 = vmatpush.bf16.msrb.mxu3 %v1235_v0  ;;  %v1371_v23 = vor.u32 %v1451_v18, %v1368_v19  ;;  %v1433_v24 = vld [vmem:[%s2086_s1 + $0x194] sm:$0xf]  ;;  %v1360_v27 = vld [vmem:[%s2086_s1 + $0x218] sm:$0xf0]  ;;  %v632_v28 = vld [vmem:[%s2088_s3 + $0x68] sm:$0xff]  ;;  %vm695_vm3 = vcmask 293888  }
  0x40   :  { %594 = vmatpush.bf16.msra.mxu0 %v1323_v1  ;;  %v1449_v26 = vld [vmem:[%s2086_s1 + $0x214] sm:$0xf]  ;;  %v1299_v29 = vor.u32 %v1433_v24, %v1296_v25  ;;  %v1431_v30 = vld [vmem:[%s2086_s1 + $0x184] sm:$0xf]  ;;  %v1288_v31 = vld [vmem:[%s2086_s1 + $0x188] sm:$0xf0] }
  0x41   :  { %559 = vmatpush.bf16.msrb.mxu1 %v1099_v11  ;;  %v1352_v32 = vld [vmem:[%s2086_s1 + $0x208] sm:$0xf0]  ;;  %v630_v33 = vld [vmem:[%s2088_s3 + $0x58] sm:$0xff]  ;;  %v1291_v34 = vor.u32 %v1431_v30, %v1288_v31  ;;  %v629_v36 = vld [vmem:[%s2088_s3 + $0x50] sm:$0xff]  ;;  %vm908_vm4 = vcmask 97280   ;;  %s1485_s25 = smov [#allocation2]  }
  0x42   :  { %572 = vmatpush.bf16.msrb.mxu2 %v1163_v12  ;;  %v628_v37 = vld [vmem:[%s2088_s3 + $0x48] sm:$0xff]  ;;  %v627_v38 = vld [vmem:[%s2088_s3 + $0x40] sm:$0xff]  ;;  %v625_v39 = vld [vmem:[%s2088_s3 + $0x30] sm:$0xff]  ;;  %s1081_s26 = sshll.u32 %s1485_s25, 4  ;;  %s1083_s28 = sshll.u32 %s2094_s9, 4  ;;  %vm1074_vm5 = vcmask 74752   ;;  %s1082_s26 = int_to_ptr.vmem [resolvable:$true] %s1081_s26  ;;  %s1084_s28 = int_to_ptr.hbm [resolvable:$true] %s1083_s28 }
  0x43   :  { %585 = vmatpush.bf16.msrb.mxu3 %v1227_v13  ;;  %v624_v40 = vld [vmem:[%s2088_s3 + $0x28] sm:$0xff]  ;;  %v623_v41 = vld [vmem:[%s2088_s3 + $0x20] sm:$0xff]  ;;  %v622_v42 = vld [vmem:[%s2088_s3 + $0x18] sm:$0xff] }
  0x44   :  { %595 = vmatpush.bf16.msra.mxu0 %v1315_v14  ;;  %560 = vmatmul.bf16.vlgmr.msrb.gmra.mxu1 %v1791_v60  ;;  %v631_v60 = vld [vmem:[%s2088_s3 + $0x60] sm:$0xff]  ;;  %v621_v43 = vld [vmem:[%s2088_s3 + $0x10] sm:$0xff]  ;;  %v636_v48 = vld [vmem:[%s2088_s3 + $0x88] sm:$0xff] }
  0x45   :  { %608 = vmatpush.bf16.msra.mxu1 %v1379_v15  ;;  %573 = vmatmul.bf16.vlgmr.msrb.gmra.mxu2 %v1793_v61  ;;  %v1363_v61 = vor.u32 %v1449_v26, %v1360_v27  ;;  %v619_v45 = vld [vmem:[%s2088_s3] sm:$0xff]  ;;  %v688_v30 = vld [vmem:[%s2090_s5 + $0x10] sm:$0xff] }
  0x46   :  { %645 = vmatpush.msra.mxu2 %v634_v20  ;;  %586 = vmatmul.bf16.vlgmr.msrb.gmra.mxu3 %v1795_v62  ;;  %v1447_v62 = vld [vmem:[%s2086_s1 + $0x204] sm:$0xf]  ;;  %v107_v46 = vld [vmem:[%s2087_s2] sm:$0x3] }
  0x47   :  { %v1355_v35 = vor.u32 %v1447_v62, %v1352_v32  ;;  %v109_v47 = vperm.slane %v107_v46, 0  ;;  %679 = vmatpush.msra.mxu3 %v636_v48  ;;  %v635_v58 = vld [vmem:[%s2088_s3 + $0x80] sm:$0xff]  ;;  %v110_v7 = vperm.slane %v107_v46, 1  ;;  %v718_v62 = vand.u32 4294901760, %v688_v30  ;;  %v687_v32 = vld [vmem:[%s2090_s5 + $0x8] sm:$0xff] }
  0x48   :  { %646 = vmatpush.msra.mxu2 %v633_v22  ;;  %596 = vmatpush.bf16.msra.mxu0 %v1307_v21 }
  0x49   :  { %609 = vmatpush.bf16.msra.mxu1 %v1371_v23  ;;  %680 = vmatpush.msra.mxu3 %v635_v58  ;;  %v690_v23 = vld [vmem:[%s2090_s5 + $0x20] sm:$0xf] }
  0x4a   :  { %647 = vmatpush.msra.mxu2 %v632_v28  ;;  %v701_v24 = vsel %vm699_vm2, %v690_v23, 0 }
  0x4b   :  { %v714_v25 = vand.u32 4294901760, %v701_v24 }
  0x4c   :  { %648 = vmatpush.msra.mxu2 %v631_v60  ;;  %597 = vmatpush.bf16.msra.mxu0 %v1299_v29  ;;  %v689_v60 = vld [vmem:[%s2090_s5 + $0x18] sm:$0xff] }
  0x4d   :  { %610 = vmatpush.bf16.msra.mxu1 %v1363_v61  ;;  %v745_v26 = vsub.f32 %v701_v24, %v714_v25  ;;  %715 = vmatpush.msrb.mxu3 %v714_v25  ;;  %v716_v61 = vand.u32 4294901760, %v689_v60 }
  0x4e   :  { %649 = vmatpush.msra.mxu2 %v630_v33 }
  0x4f   :  { %v746_v27 = vand.u32 4294901760, %v745_v26  ;;  %v751_v31 = vsub.f32 %v689_v60, %v716_v61  ;;  %717 = vmatpush.msrb.mxu3 %v716_v61 }
  0x50   :  { %598 = vmatpush.bf16.msra.mxu0 %v1291_v34  ;;  %650 = vmatpush.msra.mxu2 %v629_v36  ;;  %v757_v34 = vsub.f32 %v688_v30, %v718_v62  ;;  %v686_v36 = vld [vmem:[%s2090_s5] sm:$0xff] }
  0x51   :  { %611 = vmatpush.bf16.msra.mxu1 %v1355_v35  ;;  %v747_v28 = vsub.f32 %v745_v26, %v746_v27  ;;  %v752_v33 = vand.u32 4294901760, %v751_v31  ;;  %v720_v35 = vand.u32 4294901760, %v687_v32  ;;  %719 = vmatpush.msrb.mxu3 %v718_v62 }
  0x52   :  { %651 = vmatpush.msra.mxu2 %v628_v37 }
  0x53   :  { %599 = vmatmul.bf16.vlgmr.msra.gmra.mxu0 %v1804_v2  ;;  %v626_v2 = vld [vmem:[%s2088_s3 + $0x38] sm:$0xff]  ;;  %v748_v29 = vand.u32 4294901760, %v747_v28  ;;  %v753_v37 = vsub.f32 %v751_v31, %v752_v33  ;;  %721 = vmatpush.msrb.mxu3 %v720_v35 }
  0x54   :  { %1381 = vmatmul.msk.bf16.vlgmr.msra.gmra.mxu1 %vm484_vm0, %v1893_v44  ;;  %652 = vmatpush.msra.mxu2 %v627_v38  ;;  %v620_v44 = vld [vmem:[%s2088_s3 + $0x8] sm:$0xff]  ;;  %v758_v38 = vand.u32 4294901760, %v757_v34 }
  0x55   :  { %792 = vmatpush.msrb.mxu1 %v745_v26  ;;  %749 = vmatpush.msrb.mxu0 %v748_v29 }
  0x56   :  { %653 = vmatpush.msra.mxu2 %v626_v2  ;;  %v763_v2 = vsub.f32 %v687_v32, %v720_v35  ;;  %v1458_v32 = vld [vmem:[%s2093_s8] ss:$0 sm:$0xff] }
  0x57   :  { %795 = vmatpush.msrb.mxu1 %v751_v31 }
  0x58   :  { %654 = vmatpush.msra.mxu2 %v625_v39  ;;  %v722_v39 = vand.u32 4294901760, %v686_v36 }
  0x59   :  { %798 = vmatpush.msrb.mxu1 %v757_v34 }
  0x5a   :  { %655 = vmatpush.msra.mxu2 %v624_v40  ;;  %v754_v40 = vand.u32 4294901760, %v753_v37  ;;  %723 = vmatpush.msrb.mxu3 %v722_v39 }
  0x5b   :  { %801 = vmatpush.msrb.mxu1 %v763_v2 }
  0x5c   :  { %656 = vmatpush.msra.mxu2 %v623_v41  ;;  %v759_v41 = vsub.f32 %v757_v34, %v758_v38  ;;  %755 = vmatpush.msrb.mxu0 %v754_v40 }
  0x5e   :  { %657 = vmatpush.msra.mxu2 %v622_v42  ;;  %v764_v42 = vand.u32 4294901760, %v763_v2 }
  0x60   :  { %658 = vmatpush.msra.mxu2 %v621_v43  ;;  %v769_v43 = vsub.f32 %v686_v36, %v722_v39 }
  0x62   :  { %659 = vmatpush.msra.mxu2 %v620_v44  ;;  %v760_v44 = vand.u32 4294901760, %v759_v41  ;;  %v770_v46 = vand.u32 4294901760, %v769_v43  ;;  %804 = vmatpush.msrb.mxu1 %v769_v43 }
  0x64   :  { %660 = vmatpush.msra.mxu2 %v619_v45  ;;  %v765_v45 = vsub.f32 %v763_v2, %v764_v42  ;;  %887 = vmatpush.msra.mxu1 %v714_v25  ;;  %v771_v48 = vsub.f32 %v769_v43, %v770_v46 }
  0x65   :  { %761 = vmatpush.msrb.mxu0 %v760_v44 }
  0x66   :  { %889 = vmatpush.msra.mxu1 %v716_v61 }
  0x68   :  { %891 = vmatpush.msra.mxu1 %v718_v62 }
  0x6a   :  { %893 = vmatpush.msra.mxu1 %v720_v35 }
  0x6c   :  { %895 = vmatpush.msra.mxu1 %v722_v39 }
  0xa0   :  { %v496_v49 = vpop.f32.mrf.mxu0 }
  0xa1   :  { %v509_v50 = vpop.f32.mrf.mxu1  ;;  %v497_v51 = vadd.f32 %v496_v49, %v109_v47  ;;  %v766_v47 = vand.u32 4294901760, %v765_v45  ;;  %v772_v49 = vand.u32 4294901760, %v771_v48 }
  0xa3   :  { %v510_v52 = vadd.f32 %v509_v50, %v497_v51  ;;  %767 = vmatpush.msrb.mxu0 %v766_v47  ;;  %v1456_v50 = vld [vmem:[%s2089_s4] ss:$0 sm:$0xff] }
  0xa5   :  { %773 = vmatpush.msrb.mxu0 %v772_v49 }
  0xa7   :  { %853 = vmatpush.msra.mxu0 %v746_v27 }
  0xa8   :  { %v522_v53 = vpop.f32.mrf.mxu2  ;;  %v498_v54 = vpop.f32.mrf.mxu0 }
  0xa9   :  { %v535_v55 = vpop.f32.mrf.mxu3  ;;  %v511_v56 = vpop.f32.mrf.mxu1  ;;  %v523_v57 = vadd.f32 %v522_v53, %v510_v52  ;;  %857 = vmatpush.msra.mxu0 %v752_v33 }
  0xab   :  { %v536_v59 = vadd.f32 %v535_v55, %v523_v57  ;;  %861 = vmatpush.msra.mxu0 %v758_v38 }
  0xad   :  { %865 = vmatpush.msra.mxu0 %v764_v42 }
  0xaf   :  { %869 = vmatpush.msra.mxu0 %v770_v46 }
  0xb0   :  { %v524_v63 = vpop.f32.mrf.mxu2  ;;  %v548_v1 = vpop.f32.mrf.mxu0 }
  0xb1   :  { %v537_v0 = vpop.f32.mrf.mxu3  ;;  %v549_v3 = vadd.f32 %v548_v1, %v536_v59  ;;  %v903_v1 = vld [vmem:[%s2092_s7 + $0x8] sm:$0xf] }
  0xb3   :  { %v617_v4 = vmax.f32 %v549_v3, 0.0  ;;  %v913_v3 = vsel %vm699_vm2, %v903_v1, 0 }
  0xb5   :  { %661 = vmatmul.f32.vlgmr.msra.gmra.mxu2 %v617_v4  ;;  %v929_v4 = vand.u32 4294901760, %v913_v3 }
  0xb7   :  { %930 = vmatpush.msrb.mxu2 %v929_v4 }
  0xb8   :  { %v550_v5 = vpop.f32.mrf.mxu0 }
  0xb9   :  { %v902_v5 = vld [vmem:[%s2092_s7] sm:$0xff] }
  0xc1   :  { %v561_v6 = vpop.f32.mrf.mxu1 }
  0xc2   :  { %v562_v8 = vadd.f32 %v561_v6, %v110_v7  ;;  %v957_v6 = vsub.f32 %v913_v3, %v929_v4  ;;  %v931_v7 = vand.u32 4294901760, %v902_v5 }
  0xc4   :  { %932 = vmatpush.msrb.mxu2 %v931_v7 }
  0xc6   :  { %989 = vmatpush.msra.mxu2 %v957_v6 }
  0xc8   :  { %v574_v9 = vpop.f32.mrf.mxu2 }
  0xc9   :  { %v587_v10 = vpop.f32.mrf.mxu3  ;;  %v575_v11 = vadd.f32 %v574_v9, %v562_v8  ;;  %v563_v12 = vpop.f32.mrf.mxu1  ;;  %v958_v8 = vand.u32 4294901760, %v957_v6  ;;  %v963_v9 = vsub.f32 %v902_v5, %v931_v7 }
  0xcb   :  { %v588_v13 = vadd.f32 %v587_v10, %v575_v11  ;;  %v959_v10 = vsub.f32 %v957_v6, %v958_v8  ;;  %v964_v11 = vand.u32 4294901760, %v963_v9  ;;  %992 = vmatpush.msra.mxu2 %v963_v9 }
  0xcd   :  { %v960_v12 = vand.u32 4294901760, %v959_v10 }
  0xd0   :  { %v600_v14 = vpop.f32.mrf.mxu0  ;;  %v576_v16 = vpop.f32.mrf.mxu2 }
  0xd1   :  { %v601_v15 = vadd.f32 %v600_v14, %v588_v13  ;;  %v589_v17 = vpop.f32.mrf.mxu3  ;;  %v613_v18 = vpop.f32.mrf.mxu1  ;;  %v965_v13 = vsub.f32 %v963_v9, %v964_v11 }
  0xd3   :  { %v614_v19 = vadd.f32 %v613_v18, %v601_v15  ;;  %v966_v14 = vand.u32 4294901760, %v965_v13  ;;  %v1457_v15 = vld [vmem:[%s2091_s6] ss:$0 sm:$0xff] }
  0xd5   :  { %v618_v20 = vmax.f32 %v614_v19, 0.0 }
  0xd7   :  { %1382 = vmatmul.msk.f32.vlgmr.msra.gmra.mxu3 %vm641_vm1, %v618_v20 }
  0xd8   :  { %v602_v21 = vpop.f32.mrf.mxu0  ;;  %823 = vmatpush.msra.mxu3 %v714_v25 }
  0xd9   :  { %v615_v22 = vpop.f32.mrf.mxu1 }
  0xda   :  { %825 = vmatpush.msra.mxu3 %v716_v61 }
  0xdc   :  { %827 = vmatpush.msra.mxu3 %v718_v62 }
  0xde   :  { %829 = vmatpush.msra.mxu3 %v720_v35 }
  0xe0   :  { %831 = vmatpush.msra.mxu3 %v722_v39 }
 0x138   :  { %v662_v51 = vpop.f32.mrf.mxu2 }
 0x139   :  { %v663_v52 = vadd.f32 %v1456_v50, %v662_v51 }
 0x15a   :  { %v682_v53 = vpop.f32.mrf.mxu3 }
 0x15b   :  { %v683_v54 = vadd.f32 %v682_v53, %v663_v52 }
 0x15d   :  { %v685_v55 = vmax.f32 %v683_v54, 0.0 }
 0x15f   :  { %v697_v56 = vsel %vm695_vm3, %v685_v55, 0 }
 0x160   :  { %v724_v57 = vand.u32 4294901760, %v697_v56 }
 0x162   :  { %v725_v58 = vsub.f32 %v697_v56, %v724_v57  ;;  %775 = vmatmul.f32.vlgmr.msrb.gmra.mxu0 %v724_v57 }
 0x163   :  { %1014 = vmatpush.msrb.mxu0 %v929_v4 }
 0x164   :  { %v726_v59 = vand.u32 4294901760, %v725_v58  ;;  %807 = vmatmul.f32.vlgmr.msrb.gmra.mxu1 %v725_v58 }
 0x165   :  { %1016 = vmatpush.msrb.mxu0 %v931_v7  ;;  %1041 = vmatpush.msrb.mxu1 %v958_v8 }
 0x166   :  { %v727_v63 = vsub.f32 %v725_v58, %v726_v59 }
 0x167   :  { %1045 = vmatpush.msrb.mxu1 %v964_v11 }
 0x168   :  { %v728_v0 = vand.u32 4294901760, %v727_v63 }
 0x16a   :  { %729 = vmatmul.f32.vlgmr.msrb.gmra.mxu3 %v728_v0  ;;  %871 = vmatmul.f32.vlgmr.msra.gmra.mxu0 %v724_v57 }
 0x16b   :  { %961 = vmatpush.msrb.mxu3 %v960_v12 }
 0x16c   :  { %897 = vmatmul.f32.vlgmr.msra.gmra.mxu1 %v724_v57 }
 0x16d   :  { %967 = vmatpush.msrb.mxu3 %v966_v14 }
 0x172   :  { %835 = vmatmul.f32.vlgmr.msra.gmra.mxu3 %v726_v59 }
 0x173   :  { %1066 = vmatpush.msra.mxu3 %v929_v4 }
 0x175   :  { %1068 = vmatpush.msra.mxu3 %v931_v7 }
 0x1df   :  { %v776_v16 = vpop.f32.mrf.mxu0 }
 0x1e1   :  { %v808_v19 = vpop.f32.mrf.mxu1 }
 0x1e7   :  { %v872_v24 = vpop.f32.mrf.mxu0 }
 0x1e9   :  { %v898_v26 = vpop.f32.mrf.mxu1 }
 0x1ed   :  { %v730_v17 = vpop.f32.mrf.mxu3 }
 0x1ee   :  { %v731_v18 = vadd.f32 %v1457_v15, %v730_v17 }
 0x1f0   :  { %v777_v20 = vadd.f32 %v776_v16, %v731_v18 }
 0x1f2   :  { %v809_v21 = vadd.f32 %v808_v19, %v777_v20 }
 0x1f5   :  { %v836_v22 = vpop.f32.mrf.mxu3 }
 0x1f6   :  { %v837_v23 = vadd.f32 %v836_v22, %v809_v21 }
 0x1f8   :  { %v873_v25 = vadd.f32 %v872_v24, %v837_v23 }
 0x1fa   :  { %v899_v27 = vadd.f32 %v898_v26, %v873_v25 }
 0x1fc   :  { %v901_v28 = vmax.f32 %v899_v27, 0.0 }
 0x1fe   :  { %v910_v29 = vsel %vm908_vm4, %v901_v28, 0 }
 0x1ff   :  { %v933_v60 = vand.u32 4294901760, %v910_v29 }
 0x201   :  { %969 = vmatmul.f32.vlgmr.msrb.gmra.mxu3 %v933_v60  ;;  %1047 = vmatmul.f32.vlgmr.msrb.gmra.mxu1 %v933_v60  ;;  %v934_v61 = vsub.f32 %v910_v29, %v933_v60 }
 0x203   :  { %v935_v30 = vand.u32 4294901760, %v934_v61 }
 0x205   :  { %1020 = vmatmul.f32.vlgmr.msrb.gmra.mxu0 %v935_v30  ;;  %v936_v31 = vsub.f32 %v934_v61, %v935_v30 }
 0x207   :  { %v937_v62 = vand.u32 4294901760, %v936_v31 }
 0x209   :  { %938 = vmatmul.f32.vlgmr.msrb.gmra.mxu2 %v937_v62  ;;  %1070 = vmatmul.f32.vlgmr.msra.gmra.mxu3 %v933_v60 }
 0x211   :  { %995 = vmatmul.f32.vlgmr.msra.gmra.mxu2 %v934_v61 }
 0x27e   :  { %v1048_v40 = vpop.f32.mrf.mxu1 }
 0x282   :  { %v1021_v2 = vpop.f32.mrf.mxu0 }
 0x284   :  { %v970_v35 = vpop.f32.mrf.mxu3 }
 0x28c   :  { %v939_v33 = vpop.f32.mrf.mxu2  ;;  %v1071_v42 = vpop.f32.mrf.mxu3 }
 0x28d   :  { %v940_v34 = vadd.f32 %v1458_v32, %v939_v33 }
 0x28f   :  { %v971_v36 = vadd.f32 %v970_v35, %v940_v34 }
 0x294   :  { %v996_v37 = vpop.f32.mrf.mxu2 }
 0x295   :  { %v997_v38 = vadd.f32 %v996_v37, %v971_v36 }
 0x297   :  { %v1022_v39 = vadd.f32 %v1021_v2, %v997_v38 }
 0x299   :  { %v1049_v41 = vadd.f32 %v1048_v40, %v1022_v39 }
 0x29b   :  { %v1072_v43 = vadd.f32 %v1071_v42, %v1049_v41 }
 0x29d   :  { %1075 = vst.msk [vmem:[#allocation2] sm:$0x3] %vm1074_vm5, %v1072_v43 }
 0x29e   :  { %1086 = dma.vmem_to_hbm [thread:$0]  %s1082_s26, 32, %s1084_s28, [#allocation3]  }
 0x29f   :  { %1483 = dma.done.wait [#allocation3], 32  }
 0x2a0   :  { %1484 = vsyncadd [#allocation3], 4294967264 }
 0x2a1   :  { %1091 = vsyncpa [#allocation3], 1 }

</bundles_post_ra>
